<compile_context>
chip_gen: v7x
topology: tpu7x:2x2x1
jax: 0.10.0
libtpu: 0.0.40
codegen_flags: <defaults>
</compile_context>

<pallas_src>
import math

import jax
import jax.numpy as jnp
from jax.experimental import pallas as pl
from jax.experimental.pallas import tpu as pltpu


def _make_critic_kernel(n_layers: int):
    """Fused MLP kernel.

    Ref order: (x, w0, b0, ..., w_{L-1}, b_{L-1}, out)
      x   : (obs_dim, TILE_B)  bf16   (feature-major block of the batch)
      w_i : (out_i, in_i)      bf16   for i < L-1        (PyTorch layout)
      b_i : (out_i, 1)         f32    for i < L-1
      w_L : (in_L, 1)          f32    (final layer weight as a column)
      b_L : (1, 1)             f32
      out : (1, 1, TILE_B)     f32    (lane-dense value row for this tile)
    """

    def kernel(*refs):
        x_ref = refs[0]
        out_ref = refs[-1]
        p = refs[1:-1]

        h = x_ref[...]  # (obs_dim, TILE_B) bf16

        # Hidden layers: bf16 MXU matmul with f32 accumulation, f32 epilogue.
        for i in range(n_layers - 1):
            w = p[2 * i][...]          # (out, in)  bf16
            b = p[2 * i + 1][...]      # (out, 1)   f32, broadcasts over lanes
            acc = jnp.dot(w, h, preferred_element_type=jnp.float32) + b
            h = jnp.maximum(acc, 0.0).astype(jnp.bfloat16)   # F.relu

        # Final layer (out_features == 1): VPU multiply + sublane (XLU) reduce
        # -> lane-dense (1, TILE_B) row; avoids a degenerate N=1 MXU matmul and
        # lane-width-1 masked stores.
        w_last = p[2 * (n_layers - 1)][...]      # (in, 1) f32
        b_last = p[2 * (n_layers - 1) + 1][...]  # (1, 1)  f32
        v = jnp.sum(h.astype(jnp.float32) * w_last, axis=0, keepdims=True) + b_last
        out_ref[...] = v[None]                   # (1, 1, TILE_B)

    return kernel


def _choose_tile_b(batch: int) -> int:
    """Lane-dense batch tile: multiple of 128, capped at 512 (fits v7x VMEM)."""
    if batch >= 512:
        return 512
    return max(128, ((batch + 127) // 128) * 128)


def critic_forward(obs, params, *, tile_b=None):
    """Fused Critic MLP forward.

    obs:    (batch, obs_dim) float32
    params: list of (W, b) in PyTorch layout: W (out, in) f32, b (out,) f32
    returns (batch, 1) float32 value estimates.
    """
    batch, obs_dim = obs.shape
    n_layers = len(params)

    if tile_b is None:
        tile_b = _choose_tile_b(batch)
    num_tiles = pl.cdiv(batch, tile_b)
    b_pad = num_tiles * tile_b

    # XLA-side layout plumbing: pad batch to a tile multiple and transpose to
    # feature-major (obs_dim, b_pad) so batch maps to the lane axis in-kernel.
    obs_p = obs if b_pad == batch else jnp.pad(obs, ((0, b_pad - batch), (0, 0)))
    obs_t = obs_p.T.astype(jnp.bfloat16)

    # Kernel parameter layout / dtypes.
    kernel_params = []
    for i, (w, b) in enumerate(params):
        if i < n_layers - 1:
            kernel_params.append(w.astype(jnp.bfloat16))                   # (out, in)
            kernel_params.append(b.astype(jnp.float32).reshape(-1, 1))     # (out, 1)
        else:
            kernel_params.append(w.astype(jnp.float32).reshape(-1, 1))     # (in, 1)
            kernel_params.append(b.astype(jnp.float32).reshape(1, 1))      # (1, 1)

    # BlockSpecs: batch-tiled obs/output; constant index maps keep params
    # VMEM-resident (fetched once, not per grid step).
    in_specs = [pl.BlockSpec((obs_dim, tile_b), lambda i: (0, i))]
    in_specs += [pl.BlockSpec(kp.shape, lambda i: (0, 0)) for kp in kernel_params]
    out_spec = pl.BlockSpec((1, 1, tile_b), lambda i: (i, 0, 0))

    # Advisory cost estimate so XLA can overlap this small call with neighbors.
    flops = sum(2 * batch * w.shape[0] * w.shape[1] + batch * w.shape[0]
                for w, _ in params)
    bytes_accessed = (obs_dim * b_pad * 2 + b_pad * 4
                      + sum(int(kp.size) * kp.dtype.itemsize for kp in kernel_params))

    out = pl.pallas_call(
        _make_critic_kernel(n_layers),
        out_shape=jax.ShapeDtypeStruct((num_tiles, 1, tile_b), jnp.float32),
        grid_spec=pltpu.PrefetchScalarGridSpec(
            num_scalar_prefetch=0,
            grid=(num_tiles,),
            in_specs=in_specs,
            out_specs=out_spec,
        ),
        compiler_params=pltpu.CompilerParams(
            dimension_semantics=("parallel",),        # v7x: shard batch over 2 TCs
            vmem_limit_bytes=32 * 1024 * 1024,        # explicit; safe on v5e/v6e/v7x
        ),
        cost_estimate=pl.CostEstimate(
            flops=int(flops), transcendentals=0, bytes_accessed=int(bytes_accessed)),
    )(obs_t, *kernel_params)

    # (num_tiles, 1, tile_b) -> (batch, 1)
    return out.reshape(-1)[:batch].reshape(batch, 1)


def init_critic_params(key, obs_dim, hidden):
    """nn.Linear-style init, PyTorch layout: W (out, in), b (out,), U(+-1/sqrt(fan_in))."""
    nets_dim = [obs_dim] + list(hidden) + [1]
    params = []
    for idx in range(len(nets_dim) - 1):
        fan_in, fan_out = nets_dim[idx], nets_dim[idx + 1]
        key, kw, kb = jax.random.split(key, 3)
        bound = 1.0 / math.sqrt(fan_in)
        w = jax.random.uniform(kw, (fan_out, fan_in), jnp.float32, -bound, bound)
        b = jax.random.uniform(kb, (fan_out,), jnp.float32, -bound, bound)
        params.append((w, b))
    return params


def critic_ref(obs, params):
    """Pure-JAX reference implementing the same numerics (bf16 matmul, f32 acc)."""
    n = len(params)
    h = obs.astype(jnp.bfloat16)
    out = None
    for i, (w, b) in enumerate(params):
        if i < n - 1:
            acc = jnp.dot(h, w.astype(jnp.bfloat16).T,
                          preferred_element_type=jnp.float32) + b
            h = jnp.maximum(acc, 0.0).astype(jnp.bfloat16)
        else:
            out = jnp.dot(h.astype(jnp.float32), w.T.astype(jnp.float32),
                          preferred_element_type=jnp.float32,
                          precision=jax.lax.Precision.HIGHEST) + b
    return out


if __name__ == "__main__":
    # Small shapes consistent with the module: Critic(obs_dim=32, hidden=[64, 32]).
    batch = 8
    obs_dim = 32
    hidden = [64, 32]

    key = jax.random.PRNGKey(0)
    key, k_obs = jax.random.split(key)
    obs = jax.random.normal(k_obs, (batch, obs_dim), jnp.float32)
    params = init_critic_params(key, obs_dim, hidden)

    value = jax.jit(critic_forward)(obs, params)
    value = jax.block_until_ready(value)

    ref = critic_ref(obs, params)
    assert value.shape == (batch, 1)
    assert jnp.allclose(value, ref, atol=2e-3, rtol=2e-3), (value, ref)

    # Second check: non-multiple-of-tile batch with a multi-step grid (padding +
    # "parallel" batch axis exercised).
    batch2 = 300
    key, k_obs2 = jax.random.split(key)
    obs2 = jax.random.normal(k_obs2, (batch2, obs_dim), jnp.float32)
    value2 = jax.block_until_ready(critic_forward(obs2, params, tile_b=128))
    ref2 = critic_ref(obs2, params)
    assert value2.shape == (batch2, 1)
    assert jnp.allclose(value2, ref2, atol=2e-3, rtol=2e-3), (value2, ref2)

    print("KERNEL_OK")
</pallas_src>

<mosaic_0001>
module attributes {stable_mosaic.version = 11 : i64} {
  func.func @kernel(%arg0: i32, %arg1: memref<32x128xbf16, #tpu.memory_space<vmem>>, %arg2: memref<64x32xbf16, #tpu.memory_space<vmem>>, %arg3: memref<64x1xf32, #tpu.memory_space<vmem>>, %arg4: memref<32x64xbf16, #tpu.memory_space<vmem>>, %arg5: memref<32x1xf32, #tpu.memory_space<vmem>>, %arg6: memref<32x1xf32, #tpu.memory_space<vmem>>, %arg7: memref<1x1xf32, #tpu.memory_space<vmem>>, %arg8: memref<1x1x128xf32, #tpu.memory_space<vmem>>) attributes {dimension_semantics = [#tpu.dimension_semantics<parallel>], iteration_bounds = array<i64: 1>, scalar_prefetch = 0 : i64, scratch_operands = 0 : i64, tpu.core_type = #tpu.core_type<tc>, window_params = [{transform_indices = @transform_0, window_bounds = array<i64: 32, 128>}, {pipeline_mode = #tpu.pipeline_mode<synchronous>, transform_indices = @transform_1, window_bounds = array<i64: 64, 32>}, {pipeline_mode = #tpu.pipeline_mode<synchronous>, transform_indices = @transform_2, window_bounds = array<i64: 64, 1>}, {pipeline_mode = #tpu.pipeline_mode<synchronous>, transform_indices = @transform_3, window_bounds = array<i64: 32, 64>}, {pipeline_mode = #tpu.pipeline_mode<synchronous>, transform_indices = @transform_4, window_bounds = array<i64: 32, 1>}, {pipeline_mode = #tpu.pipeline_mode<synchronous>, transform_indices = @transform_5, window_bounds = array<i64: 32, 1>}, {pipeline_mode = #tpu.pipeline_mode<synchronous>, transform_indices = @transform_6, window_bounds = array<i64: 1, 1>}, {transform_indices = @transform_7, window_bounds = array<i64: 1, 1, 128>}]} {
    %c0 = arith.constant 0 : index
    %c0_0 = arith.constant 0 : index
    %0 = vector.load %arg1[%c0, %c0_0] : memref<32x128xbf16, #tpu.memory_space<vmem>>, vector<32x128xbf16>
    %c0_1 = arith.constant 0 : index
    %c0_2 = arith.constant 0 : index
    %1 = vector.load %arg2[%c0_1, %c0_2] : memref<64x32xbf16, #tpu.memory_space<vmem>>, vector<64x32xbf16>
    %c0_3 = arith.constant 0 : index
    %c0_4 = arith.constant 0 : index
    %2 = vector.load %arg3[%c0_3, %c0_4] : memref<64x1xf32, #tpu.memory_space<vmem>>, vector<64x1xf32>
    %cst = arith.constant dense<0.000000e+00> : vector<64x128xf32>
    %3 = tpu.matmul %1, %0, %cst {dimension_numbers = #tpu.dot_dimension_numbers<[1], [0], [0], [1], [0, 0, 1, 1], [], []>} : vector<64x32xbf16>, vector<32x128xbf16>, vector<64x128xf32> -> vector<64x128xf32>
    %4 = vector.broadcast %2 : vector<64x1xf32> to vector<64x128xf32>
    %5 = arith.addf %3, %4 : vector<64x128xf32>
    %cst_5 = arith.constant 0.000000e+00 : f32
    %6 = vector.broadcast %cst_5 : f32 to vector<64x128xf32>
    %7 = arith.maximumf %5, %6 : vector<64x128xf32>
    %8 = arith.truncf %7 : vector<64x128xf32> to vector<64x128xbf16>
    %c0_6 = arith.constant 0 : index
    %c0_7 = arith.constant 0 : index
    %9 = vector.load %arg4[%c0_6, %c0_7] : memref<32x64xbf16, #tpu.memory_space<vmem>>, vector<32x64xbf16>
    %c0_8 = arith.constant 0 : index
    %c0_9 = arith.constant 0 : index
    %10 = vector.load %arg5[%c0_8, %c0_9] : memref<32x1xf32, #tpu.memory_space<vmem>>, vector<32x1xf32>
    %cst_10 = arith.constant dense<0.000000e+00> : vector<32x128xf32>
    %11 = tpu.matmul %9, %8, %cst_10 {dimension_numbers = #tpu.dot_dimension_numbers<[1], [0], [0], [1], [0, 0, 1, 1], [], []>} : vector<32x64xbf16>, vector<64x128xbf16>, vector<32x128xf32> -> vector<32x128xf32>
    %12 = vector.broadcast %10 : vector<32x1xf32> to vector<32x128xf32>
    %13 = arith.addf %11, %12 : vector<32x128xf32>
    %cst_11 = arith.constant 0.000000e+00 : f32
    %14 = vector.broadcast %cst_11 : f32 to vector<32x128xf32>
    %15 = arith.maximumf %13, %14 : vector<32x128xf32>
    %16 = arith.truncf %15 : vector<32x128xf32> to vector<32x128xbf16>
    %c0_12 = arith.constant 0 : index
    %c0_13 = arith.constant 0 : index
    %17 = vector.load %arg6[%c0_12, %c0_13] : memref<32x1xf32, #tpu.memory_space<vmem>>, vector<32x1xf32>
    %c0_14 = arith.constant 0 : index
    %c0_15 = arith.constant 0 : index
    %18 = vector.load %arg7[%c0_14, %c0_15] : memref<1x1xf32, #tpu.memory_space<vmem>>, vector<1x1xf32>
    %19 = arith.extf %16 : vector<32x128xbf16> to vector<32x128xf32>
    %20 = vector.broadcast %17 : vector<32x1xf32> to vector<32x128xf32>
    %21 = arith.mulf %19, %20 : vector<32x128xf32>
    %cst_16 = arith.constant dense<0.000000e+00> : vector<128xf32>
    %22 = vector.multi_reduction <add>, %21, %cst_16 [0] : vector<32x128xf32> to vector<128xf32>
    %23 = vector.shape_cast %22 : vector<128xf32> to vector<1x128xf32>
    %24 = vector.broadcast %18 : vector<1x1xf32> to vector<1x128xf32>
    %25 = arith.addf %23, %24 : vector<1x128xf32>
    %26 = vector.shape_cast %25 : vector<1x128xf32> to vector<1x1x128xf32>
    %c0_17 = arith.constant 0 : index
    %c0_18 = arith.constant 0 : index
    %c0_19 = arith.constant 0 : index
    %27 = vector.load %arg8[%c0_17, %c0_18, %c0_19] : memref<1x1x128xf32, #tpu.memory_space<vmem>>, vector<1x1x128xf32>
    tpu.vector_store %arg8[%c0_17, %c0_18, %c0_19], %26 {strides = array<i32>} : memref<1x1x128xf32, #tpu.memory_space<vmem>>, vector<1x1x128xf32>,
    return
  }
  func.func @transform_0(%arg0: i32) -> (i32, i32) {
    %c0_i32 = arith.constant 0 : i32
    %c0_i32_0 = arith.constant 0 : i32
    return %c0_i32, %arg0 : i32, i32
  }
  func.func @transform_1(%arg0: i32) -> (i32, i32) {
    %c0_i32 = arith.constant 0 : i32
    %c0_i32_0 = arith.constant 0 : i32
    %c0_i32_1 = arith.constant 0 : i32
    return %c0_i32, %c0_i32_0 : i32, i32
  }
  func.func @transform_2(%arg0: i32) -> (i32, i32) {
    %c0_i32 = arith.constant 0 : i32
    %c0_i32_0 = arith.constant 0 : i32
    %c0_i32_1 = arith.constant 0 : i32
    return %c0_i32, %c0_i32_0 : i32, i32
  }
  func.func @transform_3(%arg0: i32) -> (i32, i32) {
    %c0_i32 = arith.constant 0 : i32
    %c0_i32_0 = arith.constant 0 : i32
    %c0_i32_1 = arith.constant 0 : i32
    return %c0_i32, %c0_i32_0 : i32, i32
  }
  func.func @transform_4(%arg0: i32) -> (i32, i32) {
    %c0_i32 = arith.constant 0 : i32
    %c0_i32_0 = arith.constant 0 : i32
    %c0_i32_1 = arith.constant 0 : i32
    return %c0_i32, %c0_i32_0 : i32, i32
  }
  func.func @transform_5(%arg0: i32) -> (i32, i32) {
    %c0_i32 = arith.constant 0 : i32
    %c0_i32_0 = arith.constant 0 : i32
    %c0_i32_1 = arith.constant 0 : i32
    return %c0_i32, %c0_i32_0 : i32, i32
  }
  func.func @transform_6(%arg0: i32) -> (i32, i32) {
    %c0_i32 = arith.constant 0 : i32
    %c0_i32_0 = arith.constant 0 : i32
    %c0_i32_1 = arith.constant 0 : i32
    return %c0_i32, %c0_i32_0 : i32, i32
  }
  func.func @transform_7(%arg0: i32) -> (i32, i32, i32) {
    %c0_i32 = arith.constant 0 : i32
    %c0_i32_0 = arith.constant 0 : i32
    %c0_i32_1 = arith.constant 0 : i32
    return %arg0, %c0_i32, %c0_i32_0 : i32, i32, i32
  }
}

</mosaic_0001>

<bundles_post_ra>
// kernel: critic_forward.1
= control target key start
LH: loop header
LB: loop body
LE: loop exit
PB: predicated region body
PF: predicated region fallthrough
CT: control target
= control target key end

     0   :  { %v429_v1 = vmov 0   ;;  %vm121_vm0 = vcmask 261120   ;;  %vm249_vm1 = vcmask 523264   ;;  %s554_s0 = inlined_call_operand.vmem [shape: bf16[32,128], index: 0, kind: input, shape index: {}]   ;;  %s555_s1 = inlined_call_operand.vmem [shape: bf16[64,32], index: 1, kind: input, shape index: {}]   ;;  %s556_s6 = inlined_call_operand.<no memory space> [shape: f32[1,1], index: 6, kind: input, shape index: {}]   ;;  %s557_s2 = inlined_call_operand.vmem [shape: f32[64,1], index: 2, kind: input, shape index: {}]   ;;  %s558_s4 = inlined_call_operand.vmem [shape: f32[32,1], index: 4, kind: input, shape index: {}]   ;;  %s559_s5 = inlined_call_operand.vmem [shape: f32[32,1], index: 5, kind: input, shape index: {}]   ;;  %s560_s3 = inlined_call_operand.vmem [shape: bf16[32,64], index: 3, kind: input, shape index: {}]   ;;  %s561_s7 = inlined_call_operand.vmem [shape: f32[1,1,128], index: 7, kind: output, shape index: {}]  }
   0x1   :  { %v421_v0 = vld [vmem:[%s554_s0] sm:$0xff]   ;;  %419 = vset.pattern.permute.xlu0 %v429_v1  ;;  %420 = vset.pattern.permute.xlu1 %v429_v1  ;;  %v12_v2 = vstv %s556_s6  ;;  %v422_v3 = vld [vmem:[%s554_s0 + $0x8] sm:$0xff]   ;;  %v43_v7 = vld [vmem:[%s557_s2 + $0x10] sm:$0xff] }
   0x2   :  { %13 = vst [vmem:[#allocation2] sm:$0x1] %v12_v2  ;;  %394 = vmatprep.subr.bf16.mxu0 %v421_v0  ;;  %v423_v4 = vld [vmem:[%s555_s1] sm:$0xff]   ;;  %v424_v5 = vld [vmem:[%s555_s1 + $0x8] sm:$0xff]   ;;  %v425_v8 = vld [vmem:[%s555_s1 + $0x10] sm:$0xff]   ;;  %61 = vperm.xlu1 %420, %v43_v7  }
   0x3   :  { %395 = vmatpush3.bf16.msra.mxu0 %v421_v0  ;;  %398 = vmatprep.mubr.msk.bf16.mxu0 %vm121_vm0, %v423_v4  ;;  %v41_v6 = vld [vmem:[%s557_s2] sm:$0xff]  ;;  %v42_v9 = vld [vmem:[%s557_s2 + $0x8] sm:$0xff]  ;;  %v44_v10 = vld [vmem:[%s557_s2 + $0x18] sm:$0xff] }
   0x4   :  { %396 = vmatprep.subr.bf16.mxu0 %v422_v3  ;;  %51 = vperm.xlu0 %419, %v41_v6   ;;  %v45_v11 = vld [vmem:[%s557_s2 + $0x20] sm:$0xff]  ;;  %v46_v12 = vld [vmem:[%s557_s2 + $0x28] sm:$0xff]  ;;  %v426_v13 = vld [vmem:[%s555_s1 + $0x18] sm:$0xff]  }
   0x5   :  { %v47_v14 = vld [vmem:[%s557_s2 + $0x30] sm:$0xff]  ;;  %v48_v15 = vld [vmem:[%s557_s2 + $0x38] sm:$0xff]  ;;  %v215_v16 = vld [vmem:[%s558_s4] sm:$0xff] }
   0x6   :  { %66 = vperm.xlu1 %420, %v44_v10   ;;  %v216_v17 = vld [vmem:[%s558_s4 + $0x8] sm:$0xff]  ;;  %v217_v18 = vld [vmem:[%s558_s4 + $0x10] sm:$0xff]  ;;  %v218_v19 = vld [vmem:[%s558_s4 + $0x18] sm:$0xff] }
   0x7   :  { %397 = vmatpush3.bf16.msra.mxu0 %v422_v3  ;;  %v311_v20 = vld [vmem:[%s559_s5] sm:$0xff]  ;;  %v312_v21 = vld [vmem:[%s559_s5 + $0x8] sm:$0xff]  ;;  %v313_v22 = vld [vmem:[%s559_s5 + $0x10] sm:$0xff] }
   0x8   :  { %56 = vperm.xlu0 %419, %v42_v9   ;;  %v314_v23 = vld [vmem:[%s559_s5 + $0x18] sm:$0xff]  ;;  %v427_v25 = vld [vmem:[%s560_s3] sm:$0xff]   ;;  %v428_v62 = vld [vmem:[%s560_s3 + $0x8] sm:$0xff]  }
   0x9   :  { %v315_v24 = vld [vmem:[#allocation2] sm:$0x1]  ;;  %414 = vmatprep.mubr.msk.bf16.mxu1 %vm249_vm1, %v427_v25 }
   0xa   :  { %399 = vmatmul.mubr.msk.bf16.vlgmr.msra.gmra.mrb[0].mxu0 %vm121_vm0, %v424_v5  ;;  %76 = vperm.xlu1 %420, %v46_v12  }
   0xb   :  { %402 = vmatprep.mubr.msk.bf16.mxu0 %vm121_vm0, %v425_v8 }
   0xc   :  { %71 = vperm.xlu0 %419, %v45_v11  }
   0xe   :  { %86 = vperm.xlu1 %420, %v48_v15  }
  0x10   :  { %81 = vperm.xlu0 %419, %v47_v14  }
  0x12   :  { %403 = vmatmul.mubr.msk.bf16.gmra.mrb[4].mxu0 %vm121_vm0, %v426_v13  ;;  %226 = vperm.xlu1 %420, %v216_v17  }
  0x14   :  { %221 = vperm.xlu0 %419, %v215_v16  }
  0x16   :  { %236 = vperm.xlu1 %420, %v218_v19  }
  0x18   :  { %231 = vperm.xlu0 %419, %v217_v18  }
  0x1a   :  { %327 = vperm.xlu1 %420, %v312_v21  }
  0x1c   :  { %322 = vperm.xlu0 %419, %v311_v20  }
  0x1e   :  { %337 = vperm.xlu1 %420, %v314_v23  }
  0x20   :  { %332 = vperm.xlu0 %419, %v313_v22  }
  0x24   :  { %355 = vperm.xlu0 %419, %v315_v24  }
  0x81   :  { %v62_v27 = vpop.permute.xlu1 %61 }
  0x83   :  { %v52_v26 = vpop.permute.xlu0 %51 }
  0x85   :  { %v67_v29 = vpop.permute.xlu1 %66 }
  0x87   :  { %v57_v28 = vpop.permute.xlu0 %56 }
  0x89   :  { %v77_v38 = vpop.permute.xlu1 %76 }
  0x8b   :  { %v72_v33 = vpop.permute.xlu0 %71 }
  0x8d   :  { %v87_v50 = vpop.permute.xlu1 %86 }
  0x8f   :  { %v82_v45 = vpop.permute.xlu0 %81 }
  0x91   :  { %v227_v0 = vpop.permute.xlu1 %226 }
  0x93   :  { %v222_v63 = vpop.permute.xlu0 %221 }
  0x95   :  { %v237_v5 = vpop.permute.xlu1 %236 }
  0x97   :  { %v232_v1 = vpop.permute.xlu0 %231 }
  0x99   :  { %v328_v18 = vpop.permute.xlu1 %327 }
  0x9b   :  { %v323_v15 = vpop.permute.xlu0 %322 }
  0x9f   :  { %v333_v25 = vpop.permute.xlu0 %332 }
  0xdd   :  { %v400_v30 = vpop.f32.mrb[0].mxu0 }
  0xde   :  { %v177_v31 = vadd.f32 %v400_v30, %v62_v27  ;;  %v168_v32 = vpop.f32.mrb[1].mxu0 }
  0xdf   :  { %v169_v34 = vadd.f32 %v168_v32, %v52_v26  ;;  %v401_v35 = vpop.f32.mrb[2].mxu0 }
  0xe0   :  { %v180_v36 = vadd.f32 %v401_v35, %v67_v29  ;;  %v171_v37 = vpop.f32.mrb[3].mxu0  ;;  %v201_v40 = vmax.f32 %v177_v31, 0.0  ;;  %v358_v31 = vlaneseq }
  0xe1   :  { %v172_v39 = vadd.f32 %v171_v37, %v57_v28  ;;  %v199_v42 = vmax.f32 %v169_v34, 0.0  ;;  %v338_v28 = vpop.permute.xlu1 %337 }
  0xe2   :  { %v202_v41 = vmax.f32 %v180_v36, 0.0  ;;  %v359_v34 = vshrl.u32 %v358_v31, 7 }
  0xe3   :  { %v200_v43 = vmax.f32 %v172_v39, 0.0  ;;  %v356_v39 = vpop.permute.xlu0 %355 }
  0xe4   :  { %v208_v44 = vpack.c.bf16 %v202_v41, %v201_v40  ;;  %v360_v37 = vsub.s32 0, %v359_v34 }
  0xe5   :  { %v404_v46 = vpop.f32.mrb[4].mxu0  ;;  %v207_v47 = vpack.c.bf16 %v200_v43, %v199_v42 }
  0xe6   :  { %v193_v48 = vadd.f32 %v404_v46, %v82_v45  ;;  %v184_v49 = vpop.f32.mrb[5].mxu0  ;;  %v361_v41 = vrot.slane %v356_v39, %v360_v37 }
  0xe7   :  { %v185_v51 = vadd.f32 %v184_v49, %v72_v33  ;;  %v405_v52 = vpop.f32.mrb[6].mxu0  ;;  %406 = vmatprep.subr.bf16.mxu1 %v207_v47 }
  0xe8   :  { %v196_v53 = vadd.f32 %v405_v52, %v87_v50  ;;  %v187_v54 = vpop.f32.mrb[7].mxu0  ;;  %407 = vmatpush3.bf16.msra.mxu1 %v207_v47  ;;  %v205_v56 = vmax.f32 %v193_v48, 0.0 }
  0xe9   :  { %v188_v55 = vadd.f32 %v187_v54, %v77_v38  ;;  %408 = vmatprep.subr.bf16.mxu1 %v208_v44  ;;  %v203_v58 = vmax.f32 %v185_v51, 0.0 }
  0xea   :  { %v206_v57 = vmax.f32 %v196_v53, 0.0 }
  0xeb   :  { %v204_v59 = vmax.f32 %v188_v55, 0.0 }
  0xec   :  { %v210_v60 = vpack.c.bf16 %v206_v57, %v205_v56  ;;  %409 = vmatpush3.bf16.msra.mxu1 %v208_v44 }
  0xed   :  { %v209_v61 = vpack.c.bf16 %v204_v59, %v203_v58 }
  0xef   :  { %410 = vmatprep.subr.bf16.mxu1 %v209_v61 }
  0xf0   :  { %411 = vmatpush3.bf16.msra.mxu1 %v209_v61 }
  0xf1   :  { %412 = vmatprep.subr.bf16.mxu1 %v210_v60 }
  0xf4   :  { %413 = vmatpush3.bf16.msra.mxu1 %v210_v60 }
  0xf7   :  { %415 = vmatmul.mubr.msk.bf16.vlgmr.msra.gmra.mrb[0].mxu1 %vm249_vm1, %v428_v62 }
 0x1ca   :  { %v416_v2 = vpop.f32.mrb[0].mxu1 }
 0x1cb   :  { %v299_v3 = vadd.f32 %v416_v2, %v232_v1  ;;  %v290_v4 = vpop.f32.mrb[1].mxu1 }
 0x1cc   :  { %v291_v6 = vadd.f32 %v290_v4, %v222_v63  ;;  %v417_v7 = vpop.f32.mrb[2].mxu1 }
 0x1cd   :  { %v302_v8 = vadd.f32 %v417_v7, %v237_v5  ;;  %v293_v9 = vpop.f32.mrb[3].mxu1  ;;  %v307_v11 = vmax.f32 %v299_v3, 0.0 }
 0x1ce   :  { %v294_v10 = vadd.f32 %v293_v9, %v227_v0  ;;  %v305_v13 = vmax.f32 %v291_v6, 0.0 }
 0x1cf   :  { %v308_v12 = vmax.f32 %v302_v8, 0.0 }
 0x1d0   :  { %v306_v14 = vmax.f32 %v294_v10, 0.0 }
 0x1d1   :  { %v310_v16 = vpack.c.bf16 %v308_v12, %v307_v11 }
 0x1d2   :  { %v309_v17 = vpack.c.bf16 %v306_v14, %v305_v13 }
 0x1d3   :  { %v318_v19 = vunpack.c.l.bf16 %v310_v16  ;;  %v319_v22 = vunpack.c.h.bf16 %v310_v16 }
 0x1d4   :  { %v316_v20 = vunpack.c.l.bf16 %v309_v17  ;;  %v317_v21 = vunpack.c.h.bf16 %v309_v17 }
 0x1d5   :  { %v342_v26 = vmul.f32 %v333_v25, %v318_v19  ;;  %v343_v29 = vmul.f32 %v338_v28, %v319_v22 }
 0x1d6   :  { %v340_v23 = vmul.f32 %v323_v15, %v316_v20  ;;  %v341_v24 = vmul.f32 %v328_v18, %v317_v21 }
 0x1d8   :  { %v344_v27 = vadd.f32 %v341_v24, %v340_v23 }
 0x1da   :  { %v345_v30 = vadd.f32 %v344_v27, %v342_v26 }
 0x1dc   :  { %v346_v32 = vadd.f32 %v345_v30, %v343_v29 }
 0x1de   :  { %v347_v33 = vrot.slane %v346_v32, 4 }
 0x1e0   :  { %v348_v35 = vadd.f32 %v347_v33, %v346_v32 }
 0x1e2   :  { %v349_v36 = vrot.slane %v348_v35, 2 }
 0x1e4   :  { %v350_v38 = vadd.f32 %v349_v36, %v348_v35 }
 0x1e6   :  { %v351_v40 = vrot.slane %v350_v38, 1 }
 0x1e8   :  { %v352_v42 = vadd.f32 %v351_v40, %v350_v38 }
 0x1ea   :  { %v362_v43 = vadd.f32 %v361_v41, %v352_v42 }
 0x1ec   :  { %363 = vst [vmem:[%s561_s7] sm:$0x1] %v362_v43 }

</bundles_post_ra>
